<compile_context>
chip_gen: v7x
topology: tpu7x:2x2x1
jax: 0.10.0
libtpu: 0.0.40
codegen_flags: <defaults>
</compile_context>

<pallas_src>
import functools

import jax
import jax.numpy as jnp
from jax.experimental import pallas as pl
from jax.experimental.pallas import tpu as pltpu


def _round_up(n, m):
    return ((n + m - 1) // m) * m


def _pad2(a, rows, cols):
    return jnp.pad(a, ((0, rows - a.shape[0]), (0, cols - a.shape[1])))


def mlp2_kernel(x_ref, w0_ref, b0_ref, wh_ref, bh_ref, wf_ref, bf_ref, o_ref,
                *, num_hidden_layers):
    # Hoist weight / bias loads out of the layer loop (no per-layer vld/broadcast).
    w0 = w0_ref[...]          # bf16
    wh = wh_ref[...]          # bf16
    wf = wf_ref[...]          # bf16
    b0 = b0_ref[...]          # f32 (1, Hp)
    bh = bh_ref[...]          # f32 (1, Hp)
    bf = bf_ref[...]          # f32 (1, Np)

    # initial layer + ReLU (bf16 operands on MXU, f32 accumulation / elementwise)
    h = jnp.dot(x_ref[...], w0, preferred_element_type=jnp.float32) + b0
    h = jnp.maximum(h, 0.0)

    # shared inner layer, statically unrolled (num_hidden_layers is baked in)
    for _ in range(num_hidden_layers):
        h = jnp.dot(h.astype(wh.dtype), wh, preferred_element_type=jnp.float32) + bh
        h = jnp.maximum(h, 0.0)

    # final layer (no activation), lane-dense (padded-to-128) store
    out = jnp.dot(h.astype(wf.dtype), wf, preferred_element_type=jnp.float32) + bf
    o_ref[...] = out.astype(o_ref.dtype)


def mlp2_forward(x, params, num_hidden_layers):
    """x: (B, init_dim) float32. params: (in,out) weights + (1,out) biases (f32)."""
    B, K = x.shape
    H = params["wh"].shape[0]
    N = params["wf"].shape[1]

    # Pad every lane dimension to a multiple of 128 (lane-dense loads/stores);
    # pad batch to a multiple of the batch tile (sublane-aligned).
    Kp = _round_up(K, 128)
    Hp = _round_up(H, 128)
    Np = _round_up(N, 128)
    TB = min(128, _round_up(B, 8))      # batch tile
    Bp = _round_up(B, TB)

    # Zero padding is exact: padded x columns meet zero w0 rows, padded hidden
    # columns carry bias 0 -> ReLU(0)=0 -> multiply zero wh/wf rows, and padded
    # output columns are zero and sliced off below.
    xp = _pad2(x, Bp, Kp).astype(jnp.bfloat16)
    w0 = _pad2(params["w0"], Kp, Hp).astype(jnp.bfloat16)
    b0 = _pad2(params["b0"], 1, Hp).astype(jnp.float32)
    wh = _pad2(params["wh"], Hp, Hp).astype(jnp.bfloat16)
    bh = _pad2(params["bh"], 1, Hp).astype(jnp.float32)
    wf = _pad2(params["wf"], Hp, Np).astype(jnp.bfloat16)
    bf = _pad2(params["bf"], 1, Np).astype(jnp.float32)

    kernel = functools.partial(mlp2_kernel, num_hidden_layers=num_hidden_layers)

    grid = (pl.cdiv(Bp, TB),)

    # x / out tiled over the batch axis (pipelined, megacore-parallel on v7x);
    # weights & biases use a constant index_map so they stay VMEM-resident.
    in_specs = [
        pl.BlockSpec((TB, Kp), lambda i: (i, 0)),   # x tile
        pl.BlockSpec((Kp, Hp), lambda i: (0, 0)),   # w0
        pl.BlockSpec((1, Hp), lambda i: (0, 0)),    # b0
        pl.BlockSpec((Hp, Hp), lambda i: (0, 0)),   # wh (shared inner layer)
        pl.BlockSpec((1, Hp), lambda i: (0, 0)),    # bh
        pl.BlockSpec((Hp, Np), lambda i: (0, 0)),   # wf
        pl.BlockSpec((1, Np), lambda i: (0, 0)),    # bf
    ]
    out_specs = pl.BlockSpec((TB, Np), lambda i: (i, 0))

    out_padded = pl.pallas_call(
        kernel,
        out_shape=jax.ShapeDtypeStruct((Bp, Np), jnp.float32),
        grid=grid,
        in_specs=in_specs,
        out_specs=out_specs,
        compiler_params=pltpu.CompilerParams(
            dimension_semantics=("parallel",),
        ),
    )(xp, w0, b0, wh, bh, wf, bf)

    return out_padded[:B, :N]


def init_params(key, init_dim, final_dim, num_hidden_neurons):
    """Deterministic PyTorch-style uniform(-1/sqrt(fan_in), 1/sqrt(fan_in)) init."""
    ks = jax.random.split(key, 6)

    def lin(kw, kb, fan_in, fan_out):
        bound = 1.0 / jnp.sqrt(jnp.float32(fan_in))
        w = jax.random.uniform(kw, (fan_in, fan_out), jnp.float32, -bound, bound)
        b = jax.random.uniform(kb, (1, fan_out), jnp.float32, -bound, bound)
        return w, b

    w0, b0 = lin(ks[0], ks[1], init_dim, num_hidden_neurons)
    wh, bh = lin(ks[2], ks[3], num_hidden_neurons, num_hidden_neurons)
    wf, bf = lin(ks[4], ks[5], num_hidden_neurons, final_dim)
    return {"w0": w0, "b0": b0, "wh": wh, "bh": bh, "wf": wf, "bf": bf}


def mlp2_reference(x, params, num_hidden_layers):
    h = jnp.maximum(x @ params["w0"] + params["b0"], 0.0)
    for _ in range(num_hidden_layers):
        h = jnp.maximum(h @ params["wh"] + params["bh"], 0.0)
    return h @ params["wf"] + params["bf"]


if __name__ == "__main__":
    key = jax.random.PRNGKey(0)
    k_param, k_x = jax.random.split(key)

    batch = 8
    init_dim = 4
    final_dim = 4
    num_hidden_layers = 3
    num_hidden_neurons = 32

    params = init_params(k_param, init_dim, final_dim, num_hidden_neurons)
    x = jax.random.normal(k_x, (batch, init_dim), jnp.float32)

    out = mlp2_forward(x, params, num_hidden_layers)
    out = jax.block_until_ready(out)

    ref = mlp2_reference(x, params, num_hidden_layers)
    assert out.shape == (batch, final_dim)
    # bf16 operands at the MXU (f32 accumulation): tolerance loosened accordingly.
    assert jnp.allclose(out, ref, atol=2e-2, rtol=2e-2), (
        f"max abs err {jnp.max(jnp.abs(out - ref))}")

    print("KERNEL_OK")
</pallas_src>

<mosaic_0001>
module attributes {stable_mosaic.version = 11 : i64} {
  func.func @mlp2_kernel(%arg0: i32, %arg1: memref<8x128xbf16, #tpu.memory_space<vmem>>, %arg2: memref<128x128xbf16, #tpu.memory_space<vmem>>, %arg3: memref<1x128xf32, #tpu.memory_space<vmem>>, %arg4: memref<128x128xbf16, #tpu.memory_space<vmem>>, %arg5: memref<1x128xf32, #tpu.memory_space<vmem>>, %arg6: memref<128x128xbf16, #tpu.memory_space<vmem>>, %arg7: memref<1x128xf32, #tpu.memory_space<vmem>>, %arg8: memref<8x128xf32, #tpu.memory_space<vmem>>) attributes {dimension_semantics = [#tpu.dimension_semantics<parallel>], iteration_bounds = array<i64: 1>, scalar_prefetch = 0 : i64, scratch_operands = 0 : i64, tpu.core_type = #tpu.core_type<tc>, window_params = [{transform_indices = @transform_0, window_bounds = array<i64: 8, 128>}, {pipeline_mode = #tpu.pipeline_mode<synchronous>, transform_indices = @transform_1, window_bounds = array<i64: 128, 128>}, {pipeline_mode = #tpu.pipeline_mode<synchronous>, transform_indices = @transform_2, window_bounds = array<i64: 1, 128>}, {pipeline_mode = #tpu.pipeline_mode<synchronous>, transform_indices = @transform_3, window_bounds = array<i64: 128, 128>}, {pipeline_mode = #tpu.pipeline_mode<synchronous>, transform_indices = @transform_4, window_bounds = array<i64: 1, 128>}, {pipeline_mode = #tpu.pipeline_mode<synchronous>, transform_indices = @transform_5, window_bounds = array<i64: 128, 128>}, {pipeline_mode = #tpu.pipeline_mode<synchronous>, transform_indices = @transform_6, window_bounds = array<i64: 1, 128>}, {transform_indices = @transform_7, window_bounds = array<i64: 8, 128>}]} {
    %c0 = arith.constant 0 : index
    %c0_0 = arith.constant 0 : index
    %0 = vector.load %arg2[%c0, %c0_0] : memref<128x128xbf16, #tpu.memory_space<vmem>>, vector<128x128xbf16>
    %c0_1 = arith.constant 0 : index
    %c0_2 = arith.constant 0 : index
    %1 = vector.load %arg4[%c0_1, %c0_2] : memref<128x128xbf16, #tpu.memory_space<vmem>>, vector<128x128xbf16>
    %c0_3 = arith.constant 0 : index
    %c0_4 = arith.constant 0 : index
    %2 = vector.load %arg6[%c0_3, %c0_4] : memref<128x128xbf16, #tpu.memory_space<vmem>>, vector<128x128xbf16>
    %c0_5 = arith.constant 0 : index
    %c0_6 = arith.constant 0 : index
    %3 = vector.load %arg3[%c0_5, %c0_6] : memref<1x128xf32, #tpu.memory_space<vmem>>, vector<1x128xf32>
    %c0_7 = arith.constant 0 : index
    %c0_8 = arith.constant 0 : index
    %4 = vector.load %arg5[%c0_7, %c0_8] : memref<1x128xf32, #tpu.memory_space<vmem>>, vector<1x128xf32>
    %c0_9 = arith.constant 0 : index
    %c0_10 = arith.constant 0 : index
    %5 = vector.load %arg7[%c0_9, %c0_10] : memref<1x128xf32, #tpu.memory_space<vmem>>, vector<1x128xf32>
    %c0_11 = arith.constant 0 : index
    %c0_12 = arith.constant 0 : index
    %6 = vector.load %arg1[%c0_11, %c0_12] : memref<8x128xbf16, #tpu.memory_space<vmem>>, vector<8x128xbf16>
    %cst = arith.constant dense<0.000000e+00> : vector<8x128xf32>
    %7 = tpu.matmul %6, %0, %cst {dimension_numbers = #tpu.dot_dimension_numbers<[1], [0], [0], [1], [0, 0, 1, 1], [], []>} : vector<8x128xbf16>, vector<128x128xbf16>, vector<8x128xf32> -> vector<8x128xf32>
    %8 = vector.broadcast %3 : vector<1x128xf32> to vector<8x128xf32>
    %9 = arith.addf %7, %8 : vector<8x128xf32>
    %cst_13 = arith.constant 0.000000e+00 : f32
    %10 = vector.broadcast %cst_13 : f32 to vector<8x128xf32>
    %11 = arith.maximumf %9, %10 : vector<8x128xf32>
    %12 = arith.truncf %11 : vector<8x128xf32> to vector<8x128xbf16>
    %cst_14 = arith.constant dense<0.000000e+00> : vector<8x128xf32>
    %13 = tpu.matmul %12, %1, %cst_14 {dimension_numbers = #tpu.dot_dimension_numbers<[1], [0], [0], [1], [0, 0, 1, 1], [], []>} : vector<8x128xbf16>, vector<128x128xbf16>, vector<8x128xf32> -> vector<8x128xf32>
    %14 = vector.broadcast %4 : vector<1x128xf32> to vector<8x128xf32>
    %15 = arith.addf %13, %14 : vector<8x128xf32>
    %cst_15 = arith.constant 0.000000e+00 : f32
    %16 = vector.broadcast %cst_15 : f32 to vector<8x128xf32>
    %17 = arith.maximumf %15, %16 : vector<8x128xf32>
    %18 = arith.truncf %17 : vector<8x128xf32> to vector<8x128xbf16>
    %cst_16 = arith.constant dense<0.000000e+00> : vector<8x128xf32>
    %19 = tpu.matmul %18, %1, %cst_16 {dimension_numbers = #tpu.dot_dimension_numbers<[1], [0], [0], [1], [0, 0, 1, 1], [], []>} : vector<8x128xbf16>, vector<128x128xbf16>, vector<8x128xf32> -> vector<8x128xf32>
    %20 = vector.broadcast %4 : vector<1x128xf32> to vector<8x128xf32>
    %21 = arith.addf %19, %20 : vector<8x128xf32>
    %cst_17 = arith.constant 0.000000e+00 : f32
    %22 = vector.broadcast %cst_17 : f32 to vector<8x128xf32>
    %23 = arith.maximumf %21, %22 : vector<8x128xf32>
    %24 = arith.truncf %23 : vector<8x128xf32> to vector<8x128xbf16>
    %cst_18 = arith.constant dense<0.000000e+00> : vector<8x128xf32>
    %25 = tpu.matmul %24, %1, %cst_18 {dimension_numbers = #tpu.dot_dimension_numbers<[1], [0], [0], [1], [0, 0, 1, 1], [], []>} : vector<8x128xbf16>, vector<128x128xbf16>, vector<8x128xf32> -> vector<8x128xf32>
    %26 = vector.broadcast %4 : vector<1x128xf32> to vector<8x128xf32>
    %27 = arith.addf %25, %26 : vector<8x128xf32>
    %cst_19 = arith.constant 0.000000e+00 : f32
    %28 = vector.broadcast %cst_19 : f32 to vector<8x128xf32>
    %29 = arith.maximumf %27, %28 : vector<8x128xf32>
    %30 = arith.truncf %29 : vector<8x128xf32> to vector<8x128xbf16>
    %cst_20 = arith.constant dense<0.000000e+00> : vector<8x128xf32>
    %31 = tpu.matmul %30, %2, %cst_20 {dimension_numbers = #tpu.dot_dimension_numbers<[1], [0], [0], [1], [0, 0, 1, 1], [], []>} : vector<8x128xbf16>, vector<128x128xbf16>, vector<8x128xf32> -> vector<8x128xf32>
    %32 = vector.broadcast %5 : vector<1x128xf32> to vector<8x128xf32>
    %33 = arith.addf %31, %32 : vector<8x128xf32>
    %c0_21 = arith.constant 0 : index
    %c0_22 = arith.constant 0 : index
    %34 = vector.load %arg8[%c0_21, %c0_22] : memref<8x128xf32, #tpu.memory_space<vmem>>, vector<8x128xf32>
    tpu.vector_store %arg8[%c0_21, %c0_22], %33 {strides = array<i32>} : memref<8x128xf32, #tpu.memory_space<vmem>>, vector<8x128xf32>,
    return
  }
  func.func @transform_0(%arg0: i32) -> (i32, i32) {
    %c0_i32 = arith.constant 0 : i32
    %c0_i32_0 = arith.constant 0 : i32
    return %arg0, %c0_i32 : i32, i32
  }
  func.func @transform_1(%arg0: i32) -> (i32, i32) {
    %c0_i32 = arith.constant 0 : i32
    %c0_i32_0 = arith.constant 0 : i32
    %c0_i32_1 = arith.constant 0 : i32
    return %c0_i32, %c0_i32_0 : i32, i32
  }
  func.func @transform_2(%arg0: i32) -> (i32, i32) {
    %c0_i32 = arith.constant 0 : i32
    %c0_i32_0 = arith.constant 0 : i32
    %c0_i32_1 = arith.constant 0 : i32
    return %c0_i32, %c0_i32_0 : i32, i32
  }
  func.func @transform_3(%arg0: i32) -> (i32, i32) {
    %c0_i32 = arith.constant 0 : i32
    %c0_i32_0 = arith.constant 0 : i32
    %c0_i32_1 = arith.constant 0 : i32
    return %c0_i32, %c0_i32_0 : i32, i32
  }
  func.func @transform_4(%arg0: i32) -> (i32, i32) {
    %c0_i32 = arith.constant 0 : i32
    %c0_i32_0 = arith.constant 0 : i32
    %c0_i32_1 = arith.constant 0 : i32
    return %c0_i32, %c0_i32_0 : i32, i32
  }
  func.func @transform_5(%arg0: i32) -> (i32, i32) {
    %c0_i32 = arith.constant 0 : i32
    %c0_i32_0 = arith.constant 0 : i32
    %c0_i32_1 = arith.constant 0 : i32
    return %c0_i32, %c0_i32_0 : i32, i32
  }
  func.func @transform_6(%arg0: i32) -> (i32, i32) {
    %c0_i32 = arith.constant 0 : i32
    %c0_i32_0 = arith.constant 0 : i32
    %c0_i32_1 = arith.constant 0 : i32
    return %c0_i32, %c0_i32_0 : i32, i32
  }
  func.func @transform_7(%arg0: i32) -> (i32, i32) {
    %c0_i32 = arith.constant 0 : i32
    %c0_i32_0 = arith.constant 0 : i32
    return %arg0, %c0_i32 : i32, i32
  }
}

</mosaic_0001>

<bundles_post_ra>
// kernel: tpu_custom_call.1
= control target key start
LH: loop header
LB: loop body
LE: loop exit
PB: predicated region body
PF: predicated region fallthrough
CT: control target
= control target key end

     0   :  { %12 = vsyncpa [#allocation3], 0  ;;  %s1036_s0 = inlined_call_operand.hbm [shape: bf16[8,128], index: 0, kind: input, shape index: {}]   ;;  %s1037_s1 = inlined_call_operand.hbm [shape: bf16[128,128], index: 1, kind: input, shape index: {}]   ;;  %s1038_s2 = inlined_call_operand.vmem [shape: f32[1,128], index: 2, kind: input, shape index: {}]   ;;  %s1039_s3 = inlined_call_operand.hbm [shape: bf16[128,128], index: 3, kind: input, shape index: {}]   ;;  %s1040_s4 = inlined_call_operand.vmem [shape: f32[1,128], index: 4, kind: input, shape index: {}]   ;;  %s1041_s5 = inlined_call_operand.hbm [shape: bf16[128,128], index: 5, kind: input, shape index: {}]   ;;  %s1042_s6 = inlined_call_operand.vmem [shape: f32[1,128], index: 6, kind: input, shape index: {}]   ;;  %s1043_s7 = inlined_call_operand.hbm [shape: f32[8,128], index: 7, kind: output, shape index: {}]  }
   0x1   :  { %13 = vsyncpa [#allocation6], 0 }
   0x2   :  { %14 = vsyncpa [#allocation9], 0 }
   0x3   :  { %15 = vsyncpa [#allocation4], 0  ;;  %s844_s24 = smov [#allocation5]   ;;  %s726_s28 = scalar_lea.hbm %s1037_s1, 1024 }
   0x4   :  { %s31_s25 = sshll.u32 %s844_s24, 4  ;;  %p727_p0 = scmp.ne.s32.totalorder %s1037_s1, %s726_s28  ;;  %s32_s25 = int_to_ptr.vmem [resolvable:$true] %s31_s25 }
   0x5   :  { %p730_p1 = scmp.lt.u32.totalorder %s726_s28, %s1037_s1 }
   0x7   :  { %p732_p2 = pnand %p730_p1, %p727_p0 }
   0x9   :  { %735 = shalt.err (!%p732_p2)
}
   0xa   :  { %s736_s10 = scalar_lea.vmem %s32_s25, 1024  ;;  %p741_p4 = scmp.lt.s32.totalorder %s32_s25, %s32_s25 }
   0xb   :  { %p737_p3 = scmp.ne.s32.totalorder %s32_s25, %s736_s10  ;;  %p742_p5 = scmp.lt.s32.totalorder %s736_s10, %s736_s10 }
   0xd   :  { %p743_p6 = por %p742_p5, %p741_p4 }
   0xf   :  { %p744_p7 = pnand %p743_p6, %p737_p3 }
  0x11   :  { %747 = shalt.err (!%p744_p7)
}
  0x12   :  { %s845_s11 = smov 64   ;;  %s846_s12 = smov 4  }
  0x13   :  { %37 = dma.hbm_to_vmem [thread:$0]  %s1037_s1, 1024, %s32_s25, [#allocation6], %s845_s11, %s845_s11, %s846_s12  }
  0x14   :  { %s847_s15 = smov [#allocation2]   ;;  %s848_s17 = smov [#allocation7]  }
  0x15   :  { %s22_s16 = sshll.u32 %s847_s15, 4  ;;  %s45_s18 = sshll.u32 %s848_s17, 4  ;;  %s23_s16 = int_to_ptr.vmem [resolvable:$true] %s22_s16  ;;  %s46_s18 = int_to_ptr.vmem [resolvable:$true] %s45_s18 }
  0x16   :  { %s748_s21 = scalar_lea.hbm %s1036_s0, 64 }
  0x17   :  { %p749_p8 = scmp.ne.s32.totalorder %s1036_s0, %s748_s21  ;;  %p752_p9 = scmp.lt.u32.totalorder %s748_s21, %s1036_s0 }
  0x19   :  { %p754_p10 = pnand %p752_p9, %p749_p8 }
  0x1b   :  { %757 = shalt.err (!%p754_p10)
}
  0x1c   :  { %s758_s1 = scalar_lea.vmem %s23_s16, 64  ;;  %p763_p12 = scmp.lt.s32.totalorder %s23_s16, %s23_s16 }
  0x1d   :  { %p759_p11 = scmp.ne.s32.totalorder %s23_s16, %s758_s1  ;;  %p764_p13 = scmp.lt.s32.totalorder %s758_s1, %s758_s1 }
  0x1f   :  { %p765_p0 = por %p764_p13, %p763_p12 }
  0x21   :  { %p766_p1 = pnand %p765_p0, %p759_p11 }
  0x23   :  { %769 = shalt.err (!%p766_p1)
}
  0x24   :  { %25 = dma.hbm_to_vmem [thread:$0]  %s1036_s0, 64, %s23_s16, [#allocation3]  }
  0x25   :  { %s770_s30 = scalar_lea.hbm %s1039_s3, 1024 }
  0x26   :  { %p771_p2 = scmp.ne.s32.totalorder %s1039_s3, %s770_s30  ;;  %p774_p3 = scmp.lt.u32.totalorder %s770_s30, %s1039_s3 }
  0x28   :  { %p776_p4 = pnand %p774_p3, %p771_p2 }
  0x2a   :  { %779 = shalt.err (!%p776_p4)
}
  0x2b   :  { %s780_s14 = scalar_lea.vmem %s46_s18, 1024  ;;  %p785_p6 = scmp.lt.s32.totalorder %s46_s18, %s46_s18 }
  0x2c   :  { %p781_p5 = scmp.ne.s32.totalorder %s46_s18, %s780_s14  ;;  %p786_p7 = scmp.lt.s32.totalorder %s780_s14, %s780_s14 }
  0x2e   :  { %p787_p8 = por %p786_p7, %p785_p6 }
  0x30   :  { %p788_p9 = pnand %p787_p8, %p781_p5 }
  0x32   :  { %791 = shalt.err (!%p788_p9)
}
  0x33   :  { %51 = dma.hbm_to_vmem [thread:$0]  %s1039_s3, 1024, %s46_s18, [#allocation6], %s845_s11, %s845_s11, %s846_s12  }
  0x34   :  { %s849_s16 = smov [#allocation8]   ;;  %s792_s21 = scalar_lea.hbm %s1041_s5, 1024 }
  0x35   :  { %s59_s17 = sshll.u32 %s849_s16, 4  ;;  %p793_p10 = scmp.ne.s32.totalorder %s1041_s5, %s792_s21  ;;  %s60_s17 = int_to_ptr.vmem [resolvable:$true] %s59_s17 }
  0x36   :  { %p796_p11 = scmp.lt.u32.totalorder %s792_s21, %s1041_s5 }
  0x38   :  { %p798_p12 = pnand %p796_p11, %p793_p10 }
  0x3a   :  { %801 = shalt.err (!%p798_p12)
}
  0x3b   :  { %s802_s1 = scalar_lea.vmem %s60_s17, 1024  ;;  %p807_p0 = scmp.lt.s32.totalorder %s60_s17, %s60_s17 }
  0x3c   :  { %p803_p13 = scmp.ne.s32.totalorder %s60_s17, %s802_s1  ;;  %p808_p1 = scmp.lt.s32.totalorder %s802_s1, %s802_s1 }
  0x3e   :  { %p809_p2 = por %p808_p1, %p807_p0 }
  0x40   :  { %p810_p3 = pnand %p809_p2, %p803_p13 }
  0x42   :  { %813 = shalt.err (!%p810_p3)
}
  0x43   :  { %65 = dma.hbm_to_vmem [thread:$0]  %s1041_s5, 1024, %s60_s17, [#allocation9], %s845_s11, %s845_s11, %s846_s12  }
  0x44   :  { %836 = dma.done.wait [#allocation3], 64  }
  0x45   :  { %837 = vsyncadd [#allocation3], 4294967232 }
  0x46   :  { %838 = dma.done.wait [#allocation6], 2048  }
  0x47   :  { %839 = vsyncadd [#allocation6], 4294965248 }
  0x48   :  { %840 = dma.done.wait [#allocation9], 1024  }
  0x49   :  { %841 = vsyncadd [#allocation9], 4294966272  ;;  %v850_v0 = vmov 0.0   ;;  %vm851_vm0 = vmmov 0   ;;  %v702_v1 = vld [vmem:[#allocation5] sm:$0xff]   ;;  %v703_v2 = vld [vmem:[#allocation5 + $0x8] sm:$0xff]  }
  0x4a   :  { %593 = vmatprep.subr.bf16.mxu0 %v850_v0  ;;  %609 = vmatprep.mubr.msk.bf16.mxu0 %vm851_vm0, %v850_v0  ;;  %v704_v3 = vld [vmem:[#allocation5 + $0x10] sm:$0xff]   ;;  %v958_v4 = vld [vmem:[#allocation7] sm:$0xff]   ;;  %v705_v5 = vld [vmem:[#allocation5 + $0x18] sm:$0xff]   ;;  %s852_s27 = smov [#allocation10]  }
  0x4b   :  { %613 = vmatprep.subr.bf16.mxu1 %v850_v0  ;;  %629 = vmatprep.mubr.msk.bf16.mxu1 %vm851_vm0, %v850_v0  ;;  %v962_v6 = vld [vmem:[#allocation7 + $0x8] sm:$0xff]   ;;  %v706_v7 = vld [vmem:[#allocation5 + $0x20] sm:$0xff]   ;;  %v965_v8 = vld [vmem:[#allocation7 + $0x10] sm:$0xff]   ;;  %s510_s28 = sshll.u32 %s852_s27, 4  ;;  %s511_s28 = int_to_ptr.vmem [resolvable:$true] %s510_s28 }
  0x4c   :  { %594 = vmatpush3.bf16.msra.mxu0 %v702_v1  ;;  %614 = vmatpush3.bf16.msra.mxu1 %v958_v4  ;;  %v707_v9 = vld [vmem:[#allocation5 + $0x28] sm:$0xff]   ;;  %v713_v10 = vld [vmem:[#allocation7 + $0x18] sm:$0xff]   ;;  %v708_v11 = vld [vmem:[#allocation5 + $0x30] sm:$0xff]   ;;  %s814_s29 = scalar_lea.vmem %s511_s28, 128  ;;  %p819_p5 = scmp.lt.s32.totalorder %s511_s28, %s511_s28 }
  0x4d   :  { %595 = vmatprep.subr.bf16.mxu0 %v850_v0  ;;  %615 = vmatprep.subr.bf16.mxu1 %v850_v0  ;;  %v714_v12 = vld [vmem:[#allocation7 + $0x20] sm:$0xff]   ;;  %v709_v13 = vld [vmem:[#allocation5 + $0x38] sm:$0xff]   ;;  %v715_v14 = vld [vmem:[#allocation7 + $0x28] sm:$0xff]   ;;  %p815_p4 = scmp.ne.s32.totalorder %s511_s28, %s814_s29  ;;  %p820_p6 = scmp.lt.s32.totalorder %s814_s29, %s814_s29 }
  0x4e   :  { %v132_v15 = vld [vmem:[#allocation2] sm:$0xf]  ;;  %v716_v16 = vld [vmem:[#allocation7 + $0x30] sm:$0xff]   ;;  %v718_v34 = vld [vmem:[#allocation8] sm:$0xff]  }
  0x4f   :  { %v717_v17 = vld [vmem:[#allocation7 + $0x38] sm:$0xff]   ;;  %v719_v35 = vld [vmem:[#allocation8 + $0x8] sm:$0xff]   ;;  %v720_v36 = vld [vmem:[#allocation8 + $0x10] sm:$0xff]   ;;  %p821_p7 = por %p820_p6, %p819_p5 }
  0x50   :  { %596 = vmatpush3.bf16.msra.mxu0 %v703_v2  ;;  %616 = vmatpush3.bf16.msra.mxu1 %v962_v6  ;;  %v521_v18 = vld [vmem:[%s1038_s2] ss:$0 sm:$0xff]  ;;  %v722_v38 = vld [vmem:[#allocation8 + $0x20] sm:$0xff]   ;;  %v723_v39 = vld [vmem:[#allocation8 + $0x28] sm:$0xff]  }
  0x51   :  { %597 = vmatprep.subr.bf16.mxu0 %v850_v0  ;;  %617 = vmatprep.subr.bf16.mxu1 %v850_v0  ;;  %v530_v26 = vld [vmem:[%s1040_s4] ss:$0 sm:$0xff]  ;;  %v724_v47 = vld [vmem:[#allocation8 + $0x30] sm:$0xff]   ;;  %p822_p8 = pnand %p821_p7, %p815_p4 }
  0x52   :  { %v721_v37 = vld [vmem:[#allocation8 + $0x18] sm:$0xff]  }
  0x53   :  { %v725_v48 = vld [vmem:[#allocation8 + $0x38] sm:$0xff]  }
  0x54   :  { %598 = vmatpush3.bf16.msra.mxu0 %v704_v3  ;;  %618 = vmatpush3.bf16.msra.mxu1 %v965_v8  ;;  %v539_v56 = vld [vmem:[%s1042_s6] ss:$0 sm:$0xff] }
  0x55   :  { %599 = vmatprep.subr.bf16.mxu0 %v850_v0  ;;  %619 = vmatprep.subr.bf16.mxu1 %v850_v0 }
  0x58   :  { %600 = vmatpush3.bf16.msra.mxu0 %v705_v5  ;;  %620 = vmatpush3.bf16.msra.mxu1 %v713_v10 }
  0x59   :  { %601 = vmatprep.subr.bf16.mxu0 %v850_v0  ;;  %621 = vmatprep.subr.bf16.mxu1 %v850_v0 }
  0x5c   :  { %602 = vmatpush3.bf16.msra.mxu0 %v706_v7  ;;  %622 = vmatpush3.bf16.msra.mxu1 %v714_v12 }
  0x5d   :  { %603 = vmatprep.subr.bf16.mxu0 %v850_v0  ;;  %623 = vmatprep.subr.bf16.mxu1 %v850_v0 }
  0x60   :  { %604 = vmatpush3.bf16.msra.mxu0 %v707_v9  ;;  %624 = vmatpush3.bf16.msra.mxu1 %v715_v14 }
  0x61   :  { %605 = vmatprep.subr.bf16.mxu0 %v850_v0  ;;  %625 = vmatprep.subr.bf16.mxu1 %v850_v0 }
  0x64   :  { %606 = vmatpush3.bf16.msra.mxu0 %v708_v11  ;;  %626 = vmatpush3.bf16.msra.mxu1 %v716_v16 }
  0x65   :  { %607 = vmatprep.subr.bf16.mxu0 %v850_v0  ;;  %627 = vmatprep.subr.bf16.mxu1 %v850_v0 }
  0x68   :  { %608 = vmatpush3.bf16.msra.mxu0 %v709_v13  ;;  %628 = vmatpush3.bf16.msra.mxu1 %v717_v17 }
  0x69   :  { %633 = vmatprep.subr.bf16.mxu0 %v850_v0  ;;  %653 = vmatprep.subr.bf16.mxu1 %v850_v0 }
  0x6b   :  { %610 = vmatmul.mubr.bf16.vlgmr.msra.gmra.mrb[0].mxu0 %v132_v15 }
  0x6c   :  { %634 = vmatpush3.bf16.msra.mxu0 %v958_v4  ;;  %649 = vmatprep.mubr.msk.bf16.mxu0 %vm851_vm0, %v850_v0 }
  0x6d   :  { %635 = vmatprep.subr.bf16.mxu0 %v850_v0 }
  0x70   :  { %636 = vmatpush3.bf16.msra.mxu0 %v962_v6 }
  0x71   :  { %637 = vmatprep.subr.bf16.mxu0 %v850_v0 }
  0x74   :  { %638 = vmatpush3.bf16.msra.mxu0 %v965_v8 }
  0x75   :  { %639 = vmatprep.subr.bf16.mxu0 %v850_v0 }
  0x78   :  { %640 = vmatpush3.bf16.msra.mxu0 %v713_v10 }
  0x79   :  { %641 = vmatprep.subr.bf16.mxu0 %v850_v0 }
  0x7c   :  { %642 = vmatpush3.bf16.msra.mxu0 %v714_v12 }
  0x7d   :  { %643 = vmatprep.subr.bf16.mxu0 %v850_v0 }
  0x80   :  { %644 = vmatpush3.bf16.msra.mxu0 %v715_v14 }
  0x81   :  { %645 = vmatprep.subr.bf16.mxu0 %v850_v0 }
  0x84   :  { %646 = vmatpush3.bf16.msra.mxu0 %v716_v16 }
  0x85   :  { %647 = vmatprep.subr.bf16.mxu0 %v850_v0 }
  0x88   :  { %648 = vmatpush3.bf16.msra.mxu0 %v717_v17 }
  0x89   :  { %673 = vmatprep.subr.bf16.mxu0 %v850_v0 }
 0x13e   :  { %v221_v19 = vpop.f32.mrb[0].mxu0 }
 0x13f   :  { %v222_v20 = vadd.f32 %v521_v18, %v221_v19  ;;  %v611_v21 = vpop.f32.mrb[1].mxu0 }
 0x140   :  { %v224_v22 = vpop.f32.mrb[2].mxu0 }
 0x141   :  { %v227_v23 = vmax.f32 %v222_v20, 0.0  ;;  %v612_v24 = vpop.f32.mrb[3].mxu0 }
 0x143   :  { %v228_v25 = vpack.c.bf16 %v227_v23, %v227_v23 }
 0x145   :  { %630 = vmatmul.mubr.bf16.vlgmr.msra.gmra.mrb[0].mxu1 %v228_v25 }
 0x146   :  { %654 = vmatpush3.bf16.msra.mxu1 %v958_v4  ;;  %669 = vmatprep.mubr.msk.bf16.mxu1 %vm851_vm0, %v850_v0 }
 0x147   :  { %655 = vmatprep.subr.bf16.mxu1 %v850_v0 }
 0x14a   :  { %656 = vmatpush3.bf16.msra.mxu1 %v962_v6 }
 0x14b   :  { %657 = vmatprep.subr.bf16.mxu1 %v850_v0 }
 0x14e   :  { %658 = vmatpush3.bf16.msra.mxu1 %v965_v8 }
 0x14f   :  { %659 = vmatprep.subr.bf16.mxu1 %v850_v0 }
 0x152   :  { %660 = vmatpush3.bf16.msra.mxu1 %v713_v10 }
 0x153   :  { %661 = vmatprep.subr.bf16.mxu1 %v850_v0 }
 0x156   :  { %662 = vmatpush3.bf16.msra.mxu1 %v714_v12 }
 0x157   :  { %663 = vmatprep.subr.bf16.mxu1 %v850_v0 }
 0x15a   :  { %664 = vmatpush3.bf16.msra.mxu1 %v715_v14 }
 0x15b   :  { %665 = vmatprep.subr.bf16.mxu1 %v850_v0 }
 0x15e   :  { %666 = vmatpush3.bf16.msra.mxu1 %v716_v16 }
 0x15f   :  { %667 = vmatprep.subr.bf16.mxu1 %v850_v0 }
 0x162   :  { %668 = vmatpush3.bf16.msra.mxu1 %v717_v17 }
 0x218   :  { %v317_v27 = vpop.f32.mrb[0].mxu1 }
 0x219   :  { %v318_v28 = vadd.f32 %v530_v26, %v317_v27  ;;  %v631_v29 = vpop.f32.mrb[1].mxu1 }
 0x21a   :  { %v320_v30 = vpop.f32.mrb[2].mxu1 }
 0x21b   :  { %v323_v31 = vmax.f32 %v318_v28, 0.0  ;;  %v632_v32 = vpop.f32.mrb[3].mxu1 }
 0x21d   :  { %v324_v33 = vpack.c.bf16 %v323_v31, %v323_v31 }
 0x21f   :  { %650 = vmatmul.mubr.bf16.vlgmr.msra.gmra.mrb[4].mxu0 %v324_v33 }
 0x220   :  { %689 = vmatprep.mubr.msk.bf16.mxu0 %vm851_vm0, %v850_v0  ;;  %674 = vmatpush3.bf16.msra.mxu0 %v718_v34 }
 0x221   :  { %675 = vmatprep.subr.bf16.mxu0 %v850_v0 }
 0x224   :  { %676 = vmatpush3.bf16.msra.mxu0 %v719_v35 }
 0x225   :  { %677 = vmatprep.subr.bf16.mxu0 %v850_v0 }
 0x228   :  { %678 = vmatpush3.bf16.msra.mxu0 %v720_v36 }
 0x229   :  { %679 = vmatprep.subr.bf16.mxu0 %v850_v0 }
 0x22c   :  { %680 = vmatpush3.bf16.msra.mxu0 %v721_v37 }
 0x22d   :  { %681 = vmatprep.subr.bf16.mxu0 %v850_v0 }
 0x230   :  { %682 = vmatpush3.bf16.msra.mxu0 %v722_v38 }
 0x231   :  { %683 = vmatprep.subr.bf16.mxu0 %v850_v0 }
 0x234   :  { %684 = vmatpush3.bf16.msra.mxu0 %v723_v39 }
 0x235   :  { %685 = vmatprep.subr.bf16.mxu0 %v850_v0 }
 0x238   :  { %686 = vmatpush3.bf16.msra.mxu0 %v724_v47 }
 0x239   :  { %687 = vmatprep.subr.bf16.mxu0 %v850_v0 }
 0x23c   :  { %688 = vmatpush3.bf16.msra.mxu0 %v725_v48 }
 0x2f2   :  { %v359_v40 = vpop.f32.mrb[4].mxu0 }
 0x2f3   :  { %v360_v41 = vadd.f32 %v530_v26, %v359_v40  ;;  %v651_v42 = vpop.f32.mrb[5].mxu0 }
 0x2f4   :  { %v362_v43 = vpop.f32.mrb[6].mxu0 }
 0x2f5   :  { %v365_v44 = vmax.f32 %v360_v41, 0.0  ;;  %v652_v45 = vpop.f32.mrb[7].mxu0 }
 0x2f7   :  { %v366_v46 = vpack.c.bf16 %v365_v44, %v365_v44 }
 0x2f9   :  { %670 = vmatmul.mubr.bf16.vlgmr.msra.gmra.mrb[4].mxu1 %v366_v46 }
 0x3cc   :  { %v401_v49 = vpop.f32.mrb[4].mxu1 }
 0x3cd   :  { %v402_v50 = vadd.f32 %v530_v26, %v401_v49  ;;  %v671_v51 = vpop.f32.mrb[5].mxu1 }
 0x3ce   :  { %v404_v52 = vpop.f32.mrb[6].mxu1 }
 0x3cf   :  { %v407_v53 = vmax.f32 %v402_v50, 0.0  ;;  %v672_v54 = vpop.f32.mrb[7].mxu1 }
 0x3d1   :  { %v408_v55 = vpack.c.bf16 %v407_v53, %v407_v53 }
 0x3d3   :  { %690 = vmatmul.mubr.bf16.vlgmr.msra.gmra.mrb[8].mxu0 %v408_v55 }
 0x4a6   :  { %v497_v57 = vpop.f32.mrb[8].mxu0 }
 0x4a7   :  { %v498_v58 = vadd.f32 %v539_v56, %v497_v57  ;;  %v691_v59 = vpop.f32.mrb[9].mxu0 }
 0x4a8   :  { %v500_v60 = vpop.f32.mrb[10].mxu0 }
 0x4a9   :  { %503 = vst [vmem:[#allocation10] sm:$0xff] %v498_v58  ;;  %v692_v61 = vpop.f32.mrb[11].mxu0 }
 0x4aa   :  { %825 = shalt.err (!%p822_p8)
}
 0x4ab   :  { %s826_s6 = scalar_lea.hbm %s1043_s7, 128 }
 0x4ac   :  { %p827_p9 = scmp.ne.s32.totalorder %s1043_s7, %s826_s6  ;;  %p830_p10 = scmp.lt.u32.totalorder %s826_s6, %s1043_s7 }
 0x4ae   :  { %p832_p11 = pnand %p830_p10, %p827_p9 }
 0x4b0   :  { %835 = shalt.err (!%p832_p11)
}
 0x4b1   :  { %513 = dma.vmem_to_hbm [thread:$0]  %s511_s28, 128, %s1043_s7, [#allocation4]  }
 0x4b2   :  { %842 = dma.done.wait [#allocation4], 128  }
 0x4b3   :  { %843 = vsyncadd [#allocation4], 4294967168 }
 0x4b4   :  { %517 = vsyncpa [#allocation3], 1 }
 0x4b5   :  { %518 = vsyncpa [#allocation6], 1 }
 0x4b6   :  { %519 = vsyncpa [#allocation9], 1 }
 0x4b7   :  { %520 = vsyncpa [#allocation4], 1 }

</bundles_post_ra>
